<compile_context>
chip_gen: v5e
topology: v5e:2x2
jax: 0.10.0
libtpu: 0.0.40
codegen_flags: <defaults>
</compile_context>

<pallas_src>
import functools

import jax
import jax.numpy as jnp
from jax import lax
from jax.experimental import pallas as pl
from jax.experimental.pallas import tpu as pltpu

LANES = 128
SUBLANES = 8
MAX_TILE_ROWS = 8192   # 8192 x 128 x 4B = 4 MiB per f32 input block
CHUNK_ROWS = 512       # inner accumulation chunk: bounds VMEM temporaries
SMOOTH = 1e-5


def _round_up(x, m):
    return ((x + m - 1) // m) * m


def _dice_kernel(x_ref, t_ref, o_ref, *, tile_rows, chunk_rows, num_blocks,
                 need_mask, valid_rows_last, valid_lanes_last):
    """Writes (1, 3, 8, 128) f32 partials [sum(s*t), sum(s), sum(t)] for this tile."""
    n_chunks = tile_rows // chunk_rows

    def chunk_sums(c, carry, masked):
        inter_acc, s_acc, t_acc = carry
        r0 = c * chunk_rows
        if not isinstance(r0, int):
            r0 = pl.multiple_of(r0, chunk_rows)
        x = x_ref[pl.ds(r0, chunk_rows), :].astype(jnp.float32)
        t = t_ref[pl.ds(r0, chunk_rows), :].astype(jnp.float32)
        s = jax.nn.sigmoid(x)                      # EUP transcendental
        if masked:
            # Only the final (partial) tile runs this path.  Thresholds are
            # small static ints local to the tile -> no int32 overflow.
            row = lax.broadcasted_iota(jnp.int32, (chunk_rows, LANES), 0) + c * chunk_rows
            valid = row < valid_rows_last
            if valid_lanes_last:
                lane = lax.broadcasted_iota(jnp.int32, (chunk_rows, LANES), 1)
                valid = valid | ((row == valid_rows_last) & (lane < valid_lanes_last))
            # Select (not multiply): neutralizes NaN/inf from OOB garbage reads.
            s = jnp.where(valid, s, 0.0)
            t = jnp.where(valid, t, 0.0)
        # Vreg-shaped partial sums: pure VPU adds, no cross-lane reductions.
        inter_acc += (s * t).reshape(-1, SUBLANES, LANES).sum(axis=0)
        s_acc += s.reshape(-1, SUBLANES, LANES).sum(axis=0)
        t_acc += t.reshape(-1, SUBLANES, LANES).sum(axis=0)
        return inter_acc, s_acc, t_acc

    def tile_sums(masked):
        zeros = jnp.zeros((SUBLANES, LANES), jnp.float32)
        init = (zeros, zeros, zeros)
        if n_chunks == 1:
            return chunk_sums(0, init, masked)
        return lax.fori_loop(0, n_chunks,
                             lambda c, carry: chunk_sums(c, carry, masked), init)

    def write(partials):
        inter, ssum, tsum = partials
        o_ref[0, 0] = inter
        o_ref[0, 1] = ssum
        o_ref[0, 2] = tsum

    if not need_mask:
        write(tile_sums(masked=False))
    elif num_blocks == 1:
        write(tile_sums(masked=True))
    else:
        is_last = pl.program_id(0) == num_blocks - 1

        @pl.when(jnp.logical_not(is_last))
        def _():
            write(tile_sums(masked=False))

        @pl.when(is_last)
        def _():
            write(tile_sums(masked=True))


@jax.jit
def dice_loss(inputs, targets):
    """Pallas TPU equivalent of DiceLoss.forward (returns a scalar f32)."""
    x = jnp.ravel(inputs)
    t = jnp.ravel(targets)
    n = x.shape[0]

    # ---- static tiling decisions (shapes are static under jit) --------------
    rows_needed = pl.cdiv(n, LANES)
    if rows_needed <= MAX_TILE_ROWS:
        # Small input: a single block whose row count is sublane-aligned so all
        # in-kernel folds are (.., 8, 128)-shaped.
        rows_total = _round_up(max(rows_needed, SUBLANES), SUBLANES)
        tile_rows = rows_total
        chunk_rows = CHUNK_ROWS if tile_rows % CHUNK_ROWS == 0 else tile_rows
    else:
        # Large input: big fixed tiles; the ragged last block is masked
        # in-kernel (never padded wrapper-side).
        rows_total = rows_needed
        tile_rows = MAX_TILE_ROWS
        chunk_rows = CHUNK_ROWS

    num_blocks = pl.cdiv(rows_total, tile_rows)

    # Minimal pad: only what the (rows, 128) view itself needs (no tile-multiple
    # padding).  Skipped entirely when n already divides 128 (typical volumes).
    pad = rows_total * LANES - n
    if pad:
        x = jnp.pad(x, (0, pad))
        t = jnp.pad(t, (0, pad))
    x2 = x.reshape(rows_total, LANES)
    t2 = t.reshape(rows_total, LANES)

    # Mask parameters for the final tile (all small static Python ints).
    need_mask = (num_blocks * tile_rows * LANES) != n
    last_start_row = (num_blocks - 1) * tile_rows
    valid_rows_last = n // LANES - last_start_row
    valid_lanes_last = n % LANES

    kernel = functools.partial(
        _dice_kernel,
        tile_rows=tile_rows,
        chunk_rows=chunk_rows,
        num_blocks=num_blocks,
        need_mask=need_mask,
        valid_rows_last=valid_rows_last,
        valid_lanes_last=valid_lanes_last,
    )

    # VMEM budget: double-buffered input blocks + chunk-sized temporaries + slack.
    block_bytes = tile_rows * LANES * (x2.dtype.itemsize + t2.dtype.itemsize)
    scratch_bytes = 6 * chunk_rows * LANES * 4
    vmem_limit = int(2 * block_bytes + scratch_bytes + (4 << 20))

    partials = pl.pallas_call(
        kernel,
        out_shape=jax.ShapeDtypeStruct((num_blocks, 3, SUBLANES, LANES), jnp.float32),
        grid_spec=pltpu.PrefetchScalarGridSpec(
            num_scalar_prefetch=0,
            grid=(num_blocks,),
            in_specs=[
                pl.BlockSpec((tile_rows, LANES), lambda j: (j, 0)),
                pl.BlockSpec((tile_rows, LANES), lambda j: (j, 0)),
            ],
            out_specs=pl.BlockSpec((1, 3, SUBLANES, LANES), lambda j: (j, 0, 0, 0)),
        ),
        compiler_params=pltpu.CompilerParams(
            # Fully parallel row-tile axis (no carried accumulator), so megacore
            # can shard it on 2-TC chips.
            # TODO(synk): switch to pltpu.CORE_PARALLEL once verified safe on
            # single-core generations.
            dimension_semantics=("parallel",),
            vmem_limit_bytes=vmem_limit,
        ),
    )(x2, t2)

    # One tiny cross-lane reduction on (num_blocks, 3, 8, 128) + the dice division.
    sums = jnp.sum(partials, axis=(0, 2, 3))            # (3,)
    dice = (2.0 * sums[0] + SMOOTH) / (sums[1] + sums[2] + SMOOTH)
    return (1.0 - dice).astype(jnp.float32)


def dice_loss_ref(inputs, targets):
    s = jax.nn.sigmoid(inputs.astype(jnp.float32)).ravel()
    t = targets.astype(jnp.float32).ravel()
    inter = jnp.sum(s * t)
    dice = (2.0 * inter + SMOOTH) / (jnp.sum(s) + jnp.sum(t) + SMOOTH)
    return 1.0 - dice


if __name__ == "__main__":
    key = jax.random.PRNGKey(0)
    k1, k2 = jax.random.split(key)
    # DiceLoss has no parameters; inputs are logits, targets are binary masks.
    x = jax.random.normal(k1, (2, 4, 16, 16), dtype=jnp.float32)          # NCHW logits
    tgt = (jax.random.uniform(k2, (2, 4, 16, 16)) > 0.5).astype(jnp.float32)

    loss = jax.block_until_ready(dice_loss(x, tgt))
    ref = jax.block_until_ready(dice_loss_ref(x, tgt))
    assert jnp.allclose(loss, ref, atol=1e-5, rtol=1e-5), (loss, ref)
    print("KERNEL_OK")
</pallas_src>

<mosaic_0001>
module attributes {stable_mosaic.version = 11 : i64} {
  func.func @_dice_kernel(%arg0: i32, %arg1: memref<16x128xf32, #tpu.memory_space<vmem>>, %arg2: memref<16x128xf32, #tpu.memory_space<vmem>>, %arg3: memref<1x3x8x128xf32, #tpu.memory_space<vmem>>) attributes {dimension_semantics = [#tpu.dimension_semantics<parallel>], iteration_bounds = array<i64: 1>, scalar_prefetch = 0 : i64, scratch_operands = 0 : i64, tpu.core_type = #tpu.core_type<tc>, window_params = [{transform_indices = @transform_0, window_bounds = array<i64: 16, 128>}, {transform_indices = @transform_1, window_bounds = array<i64: 16, 128>}, {transform_indices = @transform_2, window_bounds = array<i64: 1, 3, 8, 128>}]} {
    %cst = arith.constant 0.000000e+00 : f32
    %0 = vector.broadcast %cst : f32 to vector<8x128xf32>
    %c0 = arith.constant 0 : index
    %c0_0 = arith.constant 0 : index
    %1 = vector.load %arg1[%c0, %c0_0] : memref<16x128xf32, #tpu.memory_space<vmem>>, vector<16x128xf32>
    %c0_1 = arith.constant 0 : index
    %c0_2 = arith.constant 0 : index
    %2 = vector.load %arg2[%c0_1, %c0_2] : memref<16x128xf32, #tpu.memory_space<vmem>>, vector<16x128xf32>
    %3 = arith.negf %1 : vector<16x128xf32>
    %4 = math.exp %3 : vector<16x128xf32>
    %cst_3 = arith.constant 1.000000e+00 : f32
    %5 = vector.broadcast %cst_3 : f32 to vector<16x128xf32>
    %6 = arith.addf %5, %4 : vector<16x128xf32>
    %7 = arith.divf %5, %6 : vector<16x128xf32>
    %8 = arith.mulf %7, %2 : vector<16x128xf32>
    %9 = vector.shape_cast %8 : vector<16x128xf32> to vector<2x8x128xf32>
    %cst_4 = arith.constant dense<0.000000e+00> : vector<8x128xf32>
    %10 = vector.multi_reduction <add>, %9, %cst_4 [0] : vector<2x8x128xf32> to vector<8x128xf32>
    %11 = arith.addf %0, %10 : vector<8x128xf32>
    %12 = vector.shape_cast %7 : vector<16x128xf32> to vector<2x8x128xf32>
    %cst_5 = arith.constant dense<0.000000e+00> : vector<8x128xf32>
    %13 = vector.multi_reduction <add>, %12, %cst_5 [0] : vector<2x8x128xf32> to vector<8x128xf32>
    %14 = arith.addf %0, %13 : vector<8x128xf32>
    %15 = vector.shape_cast %2 : vector<16x128xf32> to vector<2x8x128xf32>
    %cst_6 = arith.constant dense<0.000000e+00> : vector<8x128xf32>
    %16 = vector.multi_reduction <add>, %15, %cst_6 [0] : vector<2x8x128xf32> to vector<8x128xf32>
    %17 = arith.addf %0, %16 : vector<8x128xf32>
    %c0_7 = arith.constant 0 : index
    %c0_8 = arith.constant 0 : index
    %c0_9 = arith.constant 0 : index
    %c0_10 = arith.constant 0 : index
    %18 = vector.load %arg3[%c0_7, %c0_8, %c0_9, %c0_10] : memref<1x3x8x128xf32, #tpu.memory_space<vmem>>, vector<1x1x8x128xf32>
    %19 = vector.shape_cast %18 : vector<1x1x8x128xf32> to vector<8x128xf32>
    %20 = vector.shape_cast %11 : vector<8x128xf32> to vector<1x1x8x128xf32>
    tpu.vector_store %arg3[%c0_7, %c0_8, %c0_9, %c0_10], %20 {strides = array<i32>} : memref<1x3x8x128xf32, #tpu.memory_space<vmem>>, vector<1x1x8x128xf32>,
    %c0_11 = arith.constant 0 : index
    %c1 = arith.constant 1 : index
    %c0_12 = arith.constant 0 : index
    %c0_13 = arith.constant 0 : index
    %21 = vector.load %arg3[%c0_11, %c1, %c0_12, %c0_13] : memref<1x3x8x128xf32, #tpu.memory_space<vmem>>, vector<1x1x8x128xf32>
    %22 = vector.shape_cast %21 : vector<1x1x8x128xf32> to vector<8x128xf32>
    %23 = vector.shape_cast %14 : vector<8x128xf32> to vector<1x1x8x128xf32>
    tpu.vector_store %arg3[%c0_11, %c1, %c0_12, %c0_13], %23 {strides = array<i32>} : memref<1x3x8x128xf32, #tpu.memory_space<vmem>>, vector<1x1x8x128xf32>,
    %c0_14 = arith.constant 0 : index
    %c2 = arith.constant 2 : index
    %c0_15 = arith.constant 0 : index
    %c0_16 = arith.constant 0 : index
    %24 = vector.load %arg3[%c0_14, %c2, %c0_15, %c0_16] : memref<1x3x8x128xf32, #tpu.memory_space<vmem>>, vector<1x1x8x128xf32>
    %25 = vector.shape_cast %24 : vector<1x1x8x128xf32> to vector<8x128xf32>
    %26 = vector.shape_cast %17 : vector<8x128xf32> to vector<1x1x8x128xf32>
    tpu.vector_store %arg3[%c0_14, %c2, %c0_15, %c0_16], %26 {strides = array<i32>} : memref<1x3x8x128xf32, #tpu.memory_space<vmem>>, vector<1x1x8x128xf32>,
    return
  }
  func.func @transform_0(%arg0: i32) -> (i32, i32) {
    %c0_i32 = arith.constant 0 : i32
    %c0_i32_0 = arith.constant 0 : i32
    return %arg0, %c0_i32 : i32, i32
  }
  func.func @transform_1(%arg0: i32) -> (i32, i32) {
    %c0_i32 = arith.constant 0 : i32
    %c0_i32_0 = arith.constant 0 : i32
    return %arg0, %c0_i32 : i32, i32
  }
  func.func @transform_2(%arg0: i32) -> (i32, i32, i32, i32) {
    %c0_i32 = arith.constant 0 : i32
    %c0_i32_0 = arith.constant 0 : i32
    %c0_i32_1 = arith.constant 0 : i32
    %c0_i32_2 = arith.constant 0 : i32
    return %arg0, %c0_i32, %c0_i32_0, %c0_i32_1 : i32, i32, i32, i32
  }
}

</mosaic_0001>

<bundles_post_ra>
// kernel: dice_loss.1
= control target key start
LH: loop header
LB: loop body
LE: loop exit
PB: predicated region body
PF: predicated region fallthrough
CT: control target
= control target key end

     0   :  { %s118_s0 = inlined_call_operand.vmem [shape: f32[16,128], index: 0, kind: input, shape index: {}]   ;;  %s119_s1 = inlined_call_operand.vmem [shape: f32[16,128], index: 1, kind: input, shape index: {}]   ;;  %s120_s2 = inlined_call_operand.vmem [shape: f32[1,3,8,128], index: 2, kind: output, shape index: {}]  }
   0x1   :  { %v11_v0 = vld [vmem:[%s118_s0] sm:$0xff]  ;;  %v12_v1 = vld [vmem:[%s118_s0 + $0x8] sm:$0xff] }
   0x2   :  { %v13_v2 = vld [vmem:[%s119_s1] sm:$0xff]  ;;  %v14_v3 = vld [vmem:[%s119_s1 + $0x8] sm:$0xff]  ;;  %v70_v4 = vmul.f32 -1.442695, %v11_v0  ;;  %v71_v5 = vmul.f32 -1.442695, %v12_v1 }
   0x3   :  { %v59_v6 = vadd.f32 %v14_v3, %v13_v2 }
   0x4   :  { %74 = vpow2.f32 %v70_v4 }
   0x5   :  { %76 = vpow2.f32 %v71_v5  ;;  %73 = vst [vmem:[%s120_s2 + $0x10] sm:$0xff] %v59_v6 }
   0xa   :  { %v75_v7 = vpop.eup %74 }
   0xb   :  { %v77_v8 = vpop.eup %76  ;;  %v21_v9 = vadd.f32 1.0, %v75_v7 }
   0xc   :  { %v22_v10 = vadd.f32 1.0, %v77_v8 }
   0xd   :  { %78 = vrcp.f32 %v21_v9  ;;  %vm28_vm0 = vweird.f32 %v21_v9  ;;  %v34_v14 = vand.u32 2147483648, %v21_v9  ;;  %v32_v17 = vand.u32 2147483647, %v21_v9 }
   0xe   :  { %80 = vrcp.f32 %v22_v10  ;;  %v49_v18 = vand.u32 2147483648, %v22_v10  ;;  %vm43_vm2 = vweird.f32 %v22_v10  ;;  %v47_v20 = vand.u32 2147483647, %v22_v10 }
   0xf   :  { %v35_v22 = vor.u32 1.1754944e-38, %v34_v14  ;;  %vm33_vm5 = vcmp.eq.f32.partialorder %v32_v17, 8.507059e+37 }
  0x10   :  { %v50_v25 = vor.u32 1.1754944e-38, %v49_v18  ;;  %vm48_vm7 = vcmp.eq.f32.partialorder %v47_v20, 8.507059e+37 }
  0x13   :  { %v79_v11 = vpop.eup %78 }
  0x14   :  { %v81_v12 = vpop.eup %80  ;;  %v24_v13 = vmul.f32 %v79_v11, %v21_v9  ;;  %vm29_vm1 = vweird.f32 %v79_v11 }
  0x15   :  { %v39_v15 = vmul.f32 %v81_v12, %v22_v10  ;;  %vm44_vm3 = vweird.f32 %v81_v12  ;;  %vm30_vm4 = vmor %vm28_vm0, %vm29_vm1 }
  0x16   :  { %v25_v16 = vsub.f32 1.0, %v24_v13  ;;  %vm45_vm6 = vmor %vm43_vm2, %vm44_vm3 }
  0x17   :  { %v40_v19 = vsub.f32 1.0, %v39_v15 }
  0x18   :  { %v26_v21 = vmul.f32 %v79_v11, %v25_v16 }
  0x19   :  { %v41_v23 = vmul.f32 %v81_v12, %v40_v19 }
  0x1a   :  { %v27_v24 = vadd.f32 %v79_v11, %v26_v21 }
  0x1b   :  { %v42_v26 = vadd.f32 %v81_v12, %v41_v23 }
  0x1c   :  { %v31_v27 = vsel %vm30_vm4, %v79_v11, %v27_v24 }
  0x1d   :  { %v36_v28 = vsel %vm33_vm5, %v35_v22, %v31_v27  ;;  %v46_v29 = vsel %vm45_vm6, %v81_v12, %v42_v26 }
  0x1e   :  { %v51_v30 = vsel %vm48_vm7, %v50_v25, %v46_v29  ;;  %v53_v31 = vmul.f32 %v36_v28, %v13_v2 }
  0x1f   :  { %v54_v32 = vmul.f32 %v51_v30, %v14_v3  ;;  %v57_v33 = vadd.f32 %v51_v30, %v36_v28 }
  0x21   :  { %v55_v34 = vadd.f32 %v54_v32, %v53_v31  ;;  %72 = vst [vmem:[%s120_s2 + $0x8] sm:$0xff] %v57_v33 }
  0x23   :  { %61 = vst [vmem:[%s120_s2] sm:$0xff] %v55_v34 }

</bundles_post_ra>
